<compile_context>
chip_gen: v5e
topology: v5e:2x2
jax: 0.10.0
libtpu: 0.0.40
codegen_flags: <defaults>
</compile_context>

<pallas_src>
import jax
import jax.numpy as jnp
from jax.experimental import pallas as pl
from jax.experimental.pallas import tpu as pltpu


def _round_up(x, m):
    return ((x + m - 1) // m) * m


def _dqn_kernel(x_ref, w1_ref, b1_ref, w2_ref, b2_ref, w3_ref, b3_ref, o_ref):
    # In-kernel cast of the f32 x tile to bf16 for the MXU (f32 accumulation).
    x = x_ref[...].astype(w1_ref.dtype)
    # Layer 1: Linear + bias/ReLU epilogue in f32.
    h1 = jnp.dot(x, w1_ref[...], preferred_element_type=jnp.float32)
    h1 = jnp.maximum(h1 + b1_ref[...], 0.0)
    # Layer 2: Linear + ReLU.
    h2 = jnp.dot(h1.astype(w2_ref.dtype), w2_ref[...],
                 preferred_element_type=jnp.float32)
    h2 = jnp.maximum(h2 + b2_ref[...], 0.0)
    # Layer 3: Linear (no activation) -> narrow (round_up(action_dim,8)) Q block.
    q = jnp.dot(h2.astype(w3_ref.dtype), w3_ref[...],
                preferred_element_type=jnp.float32)
    o_ref[...] = (q + b3_ref[...]).astype(o_ref.dtype)


def prepare_dqn_params(params, *, compute_dtype=jnp.bfloat16):
    """One-time prep: pad the output layer to a multiple of 8 columns and cast
    matmul operands to bf16 (biases stay f32). Call once, reuse every step."""
    action_dim = params["w3"].shape[1]
    out_w = max(8, _round_up(action_dim, 8))
    w3 = jnp.pad(params["w3"], ((0, 0), (0, out_w - action_dim)))
    b3 = jnp.pad(params["b3"], ((0, 0), (0, out_w - action_dim)))
    return dict(
        w1=params["w1"].astype(compute_dtype),
        b1=params["b1"].astype(jnp.float32),
        w2=params["w2"].astype(compute_dtype),
        b2=params["b2"].astype(jnp.float32),
        w3=w3.astype(compute_dtype),
        b3=b3.astype(jnp.float32),
        action_dim=action_dim,   # static python ints (metadata, not traced)
        out_w=out_w,
    )


def _choose_tm(batch, tm):
    if tm is not None:
        return _round_up(max(int(tm), 16), 16)
    if batch <= 16:
        return 16
    # Aim for >= 2 grid steps (lets v7x shard the parallel batch axis across
    # both TensorCores), capped at 2048 rows (per-step VMEM stays tiny).
    return min(2048, _round_up(pl.cdiv(batch, 2), 16))


def dqn_forward(x, prepped, *, tm=None):
    """Fused DQN forward pass.

    x: [batch, state_dim] float32
    prepped: output of prepare_dqn_params()
    returns: [batch, action_dim] float32
    """
    batch, state_dim = x.shape
    action_dim = prepped["action_dim"]
    out_w = prepped["out_w"]

    tm = _choose_tm(batch, tm)
    padded_batch = pl.cdiv(batch, tm) * tm
    if padded_batch != batch:
        x = jnp.pad(x, ((0, padded_batch - batch), (0, 0)))

    grid = (padded_batch // tm,)

    # Weights/biases: full-extent blocks with constant index_map -> DMA'd once,
    # VMEM-resident across all grid steps.
    def const(a):
        nd = a.ndim
        return pl.BlockSpec(a.shape, lambda i, _nd=nd: (0,) * _nd)

    out = pl.pallas_call(
        _dqn_kernel,
        out_shape=jax.ShapeDtypeStruct((padded_batch, out_w), jnp.float32),
        grid_spec=pltpu.PrefetchScalarGridSpec(
            num_scalar_prefetch=0,
            grid=grid,
            in_specs=[
                pl.BlockSpec((tm, state_dim), lambda i: (i, 0)),  # x tile (f32)
                const(prepped["w1"]), const(prepped["b1"]),
                const(prepped["w2"]), const(prepped["b2"]),
                const(prepped["w3"]), const(prepped["b3"]),
            ],
            out_specs=pl.BlockSpec((tm, out_w), lambda i: (i, 0)),
        ),
        compiler_params=pltpu.CompilerParams(
            dimension_semantics=("parallel",)),  # both TCs on v7x
    )(x, prepped["w1"], prepped["b1"], prepped["w2"], prepped["b2"],
      prepped["w3"], prepped["b3"])

    # Drop batch padding and the (<=7) zero-padded output columns.
    # NOTE: rows >= batch of the padded buffer contain garbage (bias+ReLU of
    # zero rows); never read them downstream.
    return out[:batch, :action_dim]


def init_dqn_params(key, state_dim, action_dim, hidden=64):
    """PyTorch nn.Linear default init: U(-1/sqrt(fan_in), +1/sqrt(fan_in))."""
    ks = jax.random.split(key, 6)

    def lin(kw, kb, fan_in, fan_out):
        bound = 1.0 / jnp.sqrt(float(fan_in))
        w = jax.random.uniform(kw, (fan_in, fan_out), jnp.float32, -bound, bound)
        b = jax.random.uniform(kb, (1, fan_out), jnp.float32, -bound, bound)
        return w, b

    w1, b1 = lin(ks[0], ks[1], state_dim, hidden)
    w2, b2 = lin(ks[2], ks[3], hidden, hidden)
    w3, b3 = lin(ks[4], ks[5], hidden, action_dim)
    return dict(w1=w1, b1=b1, w2=w2, b2=b2, w3=w3, b3=b3)


def dqn_reference(x, p, compute_dtype=jnp.bfloat16):
    """Pure-JAX reference mirroring the kernel's bf16-operand / f32-accumulate math."""
    cd = compute_dtype
    h1 = jnp.dot(x.astype(cd), p["w1"].astype(cd),
                 preferred_element_type=jnp.float32) + p["b1"]
    h1 = jnp.maximum(h1, 0.0)
    h2 = jnp.dot(h1.astype(cd), p["w2"].astype(cd),
                 preferred_element_type=jnp.float32) + p["b2"]
    h2 = jnp.maximum(h2, 0.0)
    return jnp.dot(h2.astype(cd), p["w3"].astype(cd),
                   preferred_element_type=jnp.float32) + p["b3"]


if __name__ == "__main__":
    key = jax.random.PRNGKey(0)
    k_param, k_x, k_x2 = jax.random.split(key, 3)

    batch, state_dim, action_dim = 8, 16, 4
    params = init_dqn_params(k_param, state_dim, action_dim, hidden=64)
    prepped = prepare_dqn_params(params)  # one-time prep, reused every call

    # Small acting-style batch (tm=16, grid=(1,), batch padded 8->16).
    x = jax.random.normal(k_x, (batch, state_dim), dtype=jnp.float32)
    out = jax.block_until_ready(dqn_forward(x, prepped))
    ref = dqn_reference(x, params)
    assert out.shape == (batch, action_dim)
    assert jnp.allclose(out, ref, atol=1e-2, rtol=1e-2)

    # Larger ragged batch: default tm heuristic gives grid >= 2 (megacore-friendly).
    batch2 = 300
    x2 = jax.random.normal(k_x2, (batch2, state_dim), dtype=jnp.float32)
    out2 = jax.block_until_ready(dqn_forward(x2, prepped))
    ref2 = dqn_reference(x2, params)
    assert out2.shape == (batch2, action_dim)
    assert jnp.allclose(out2, ref2, atol=1e-2, rtol=1e-2)

    # Explicit tile override path (ragged: 300 -> 384, grid=(3,)).
    out3 = jax.block_until_ready(dqn_forward(x2, prepped, tm=128))
    assert jnp.allclose(out3, ref2, atol=1e-2, rtol=1e-2)

    print("KERNEL_OK")
</pallas_src>

<mosaic_0001>
module attributes {stable_mosaic.version = 11 : i64} {
  func.func @_dqn_kernel(%arg0: i32, %arg1: memref<16x16xf32, #tpu.memory_space<vmem>>, %arg2: memref<16x64xbf16, #tpu.memory_space<vmem>>, %arg3: memref<1x64xf32, #tpu.memory_space<vmem>>, %arg4: memref<64x64xbf16, #tpu.memory_space<vmem>>, %arg5: memref<1x64xf32, #tpu.memory_space<vmem>>, %arg6: memref<64x8xbf16, #tpu.memory_space<vmem>>, %arg7: memref<1x8xf32, #tpu.memory_space<vmem>>, %arg8: memref<16x8xf32, #tpu.memory_space<vmem>>) attributes {dimension_semantics = [#tpu.dimension_semantics<parallel>], iteration_bounds = array<i64: 1>, scalar_prefetch = 0 : i64, scratch_operands = 0 : i64, tpu.core_type = #tpu.core_type<tc>, window_params = [{transform_indices = @transform_0, window_bounds = array<i64: 16, 16>}, {pipeline_mode = #tpu.pipeline_mode<synchronous>, transform_indices = @transform_1, window_bounds = array<i64: 16, 64>}, {pipeline_mode = #tpu.pipeline_mode<synchronous>, transform_indices = @transform_2, window_bounds = array<i64: 1, 64>}, {pipeline_mode = #tpu.pipeline_mode<synchronous>, transform_indices = @transform_3, window_bounds = array<i64: 64, 64>}, {pipeline_mode = #tpu.pipeline_mode<synchronous>, transform_indices = @transform_4, window_bounds = array<i64: 1, 64>}, {pipeline_mode = #tpu.pipeline_mode<synchronous>, transform_indices = @transform_5, window_bounds = array<i64: 64, 8>}, {pipeline_mode = #tpu.pipeline_mode<synchronous>, transform_indices = @transform_6, window_bounds = array<i64: 1, 8>}, {transform_indices = @transform_7, window_bounds = array<i64: 16, 8>}]} {
    %c0 = arith.constant 0 : index
    %c0_0 = arith.constant 0 : index
    %0 = vector.load %arg1[%c0, %c0_0] : memref<16x16xf32, #tpu.memory_space<vmem>>, vector<16x16xf32>
    %1 = arith.truncf %0 : vector<16x16xf32> to vector<16x16xbf16>
    %c0_1 = arith.constant 0 : index
    %c0_2 = arith.constant 0 : index
    %2 = vector.load %arg2[%c0_1, %c0_2] : memref<16x64xbf16, #tpu.memory_space<vmem>>, vector<16x64xbf16>
    %cst = arith.constant dense<0.000000e+00> : vector<16x64xf32>
    %3 = tpu.matmul %1, %2, %cst {dimension_numbers = #tpu.dot_dimension_numbers<[1], [0], [0], [1], [0, 0, 1, 1], [], []>} : vector<16x16xbf16>, vector<16x64xbf16>, vector<16x64xf32> -> vector<16x64xf32>
    %c0_3 = arith.constant 0 : index
    %c0_4 = arith.constant 0 : index
    %4 = vector.load %arg3[%c0_3, %c0_4] : memref<1x64xf32, #tpu.memory_space<vmem>>, vector<1x64xf32>
    %5 = vector.broadcast %4 : vector<1x64xf32> to vector<16x64xf32>
    %6 = arith.addf %3, %5 : vector<16x64xf32>
    %cst_5 = arith.constant 0.000000e+00 : f32
    %7 = vector.broadcast %cst_5 : f32 to vector<16x64xf32>
    %8 = arith.maximumf %6, %7 : vector<16x64xf32>
    %9 = arith.truncf %8 : vector<16x64xf32> to vector<16x64xbf16>
    %c0_6 = arith.constant 0 : index
    %c0_7 = arith.constant 0 : index
    %10 = vector.load %arg4[%c0_6, %c0_7] : memref<64x64xbf16, #tpu.memory_space<vmem>>, vector<64x64xbf16>
    %cst_8 = arith.constant dense<0.000000e+00> : vector<16x64xf32>
    %11 = tpu.matmul %9, %10, %cst_8 {dimension_numbers = #tpu.dot_dimension_numbers<[1], [0], [0], [1], [0, 0, 1, 1], [], []>} : vector<16x64xbf16>, vector<64x64xbf16>, vector<16x64xf32> -> vector<16x64xf32>
    %c0_9 = arith.constant 0 : index
    %c0_10 = arith.constant 0 : index
    %12 = vector.load %arg5[%c0_9, %c0_10] : memref<1x64xf32, #tpu.memory_space<vmem>>, vector<1x64xf32>
    %13 = vector.broadcast %12 : vector<1x64xf32> to vector<16x64xf32>
    %14 = arith.addf %11, %13 : vector<16x64xf32>
    %cst_11 = arith.constant 0.000000e+00 : f32
    %15 = vector.broadcast %cst_11 : f32 to vector<16x64xf32>
    %16 = arith.maximumf %14, %15 : vector<16x64xf32>
    %17 = arith.truncf %16 : vector<16x64xf32> to vector<16x64xbf16>
    %c0_12 = arith.constant 0 : index
    %c0_13 = arith.constant 0 : index
    %18 = vector.load %arg6[%c0_12, %c0_13] : memref<64x8xbf16, #tpu.memory_space<vmem>>, vector<64x8xbf16>
    %cst_14 = arith.constant dense<0.000000e+00> : vector<16x8xf32>
    %19 = tpu.matmul %17, %18, %cst_14 {dimension_numbers = #tpu.dot_dimension_numbers<[1], [0], [0], [1], [0, 0, 1, 1], [], []>} : vector<16x64xbf16>, vector<64x8xbf16>, vector<16x8xf32> -> vector<16x8xf32>
    %c0_15 = arith.constant 0 : index
    %c0_16 = arith.constant 0 : index
    %20 = vector.load %arg7[%c0_15, %c0_16] : memref<1x8xf32, #tpu.memory_space<vmem>>, vector<1x8xf32>
    %21 = vector.broadcast %20 : vector<1x8xf32> to vector<16x8xf32>
    %22 = arith.addf %19, %21 : vector<16x8xf32>
    %c0_17 = arith.constant 0 : index
    %c0_18 = arith.constant 0 : index
    %23 = vector.load %arg8[%c0_17, %c0_18] : memref<16x8xf32, #tpu.memory_space<vmem>>, vector<16x8xf32>
    tpu.vector_store %arg8[%c0_17, %c0_18], %22 {strides = array<i32>} : memref<16x8xf32, #tpu.memory_space<vmem>>, vector<16x8xf32>,
    return
  }
  func.func @transform_0(%arg0: i32) -> (i32, i32) {
    %c0_i32 = arith.constant 0 : i32
    %c0_i32_0 = arith.constant 0 : i32
    return %arg0, %c0_i32 : i32, i32
  }
  func.func @transform_1(%arg0: i32) -> (i32, i32) {
    %c0_i32 = arith.constant 0 : i32
    %c0_i32_0 = arith.constant 0 : i32
    %c0_i32_1 = arith.constant 0 : i32
    return %c0_i32, %c0_i32_0 : i32, i32
  }
  func.func @transform_2(%arg0: i32) -> (i32, i32) {
    %c0_i32 = arith.constant 0 : i32
    %c0_i32_0 = arith.constant 0 : i32
    %c0_i32_1 = arith.constant 0 : i32
    return %c0_i32, %c0_i32_0 : i32, i32
  }
  func.func @transform_3(%arg0: i32) -> (i32, i32) {
    %c0_i32 = arith.constant 0 : i32
    %c0_i32_0 = arith.constant 0 : i32
    %c0_i32_1 = arith.constant 0 : i32
    return %c0_i32, %c0_i32_0 : i32, i32
  }
  func.func @transform_4(%arg0: i32) -> (i32, i32) {
    %c0_i32 = arith.constant 0 : i32
    %c0_i32_0 = arith.constant 0 : i32
    %c0_i32_1 = arith.constant 0 : i32
    return %c0_i32, %c0_i32_0 : i32, i32
  }
  func.func @transform_5(%arg0: i32) -> (i32, i32) {
    %c0_i32 = arith.constant 0 : i32
    %c0_i32_0 = arith.constant 0 : i32
    %c0_i32_1 = arith.constant 0 : i32
    return %c0_i32, %c0_i32_0 : i32, i32
  }
  func.func @transform_6(%arg0: i32) -> (i32, i32) {
    %c0_i32 = arith.constant 0 : i32
    %c0_i32_0 = arith.constant 0 : i32
    %c0_i32_1 = arith.constant 0 : i32
    return %c0_i32, %c0_i32_0 : i32, i32
  }
  func.func @transform_7(%arg0: i32) -> (i32, i32) {
    %c0_i32 = arith.constant 0 : i32
    %c0_i32_0 = arith.constant 0 : i32
    return %arg0, %c0_i32 : i32, i32
  }
}

</mosaic_0001>

<bundles_post_ra>
// kernel: tpu_custom_call.1
= control target key start
LH: loop header
LB: loop body
LE: loop exit
PB: predicated region body
PF: predicated region fallthrough
CT: control target
= control target key end

     0   :  { %12 = vsyncpa [#allocation3], 0  ;;  %s416_s0 = inlined_call_operand.hbm [shape: f32[16,16], index: 0, kind: input, shape index: {}]   ;;  %s417_s1 = inlined_call_operand.hbm [shape: bf16[16,64], index: 1, kind: input, shape index: {}]   ;;  %s418_s2 = inlined_call_operand.vmem [shape: f32[1,64], index: 2, kind: input, shape index: {}]   ;;  %s419_s3 = inlined_call_operand.vmem [shape: bf16[64,64], index: 3, kind: input, shape index: {}]   ;;  %s420_s4 = inlined_call_operand.vmem [shape: f32[1,64], index: 4, kind: input, shape index: {}]   ;;  %s421_s5 = inlined_call_operand.vmem [shape: bf16[64,8], index: 5, kind: input, shape index: {}]   ;;  %s422_s6 = inlined_call_operand.vmem [shape: f32[1,8], index: 6, kind: input, shape index: {}]   ;;  %s423_s7 = inlined_call_operand.vmem [shape: f32[16,8], index: 7, kind: output, shape index: {}]  }
   0x1   :  { %s18_s26 = sshll.u32 %s416_s0, 4  ;;  %s19_s26 = int_to_ptr.hbm [resolvable:$true] %s18_s26 }
   0x2   :  { %13 = vsyncpa [#allocation5], 0  ;;  %s323_s27 = smov [#allocation2]   ;;  %s31_s8 = sshll.u32 %s417_s1, 4  ;;  %s32_s8 = int_to_ptr.hbm [resolvable:$true] %s31_s8 }
   0x3   :  { %s20_s28 = sshll.u32 %s323_s27, 4  ;;  %s324_s9 = smov 128   ;;  %s21_s28 = int_to_ptr.vmem [resolvable:$true] %s20_s28 }
   0x4   :  { %s325_s10 = smov 8   ;;  %s326_s11 = smov [#allocation4]  }
   0x5   :  { %26 = dma.hbm_to_vmem [thread:$0]  %s19_s26, 256, %s21_s28, [#allocation3], %s324_s9, %s324_s9, %s325_s10  }
   0x6   :  { %s33_s12 = sshll.u32 %s326_s11, 4  ;;  %s327_s13 = smov 64   ;;  %s34_s12 = int_to_ptr.vmem [resolvable:$true] %s33_s12 }
   0x7   :  { %s328_s14 = smov 4  }
   0x8   :  { %39 = dma.hbm_to_vmem [thread:$0]  %s32_s8, 128, %s34_s12, [#allocation5], %s327_s13, %s327_s13, %s328_s14  }
   0x9   :  { %319 = dma.done.wait [#allocation3], 256  }
   0xa   :  { %320 = vsyncadd [#allocation3], 4294967040 }
   0xb   :  { %321 = dma.done.wait [#allocation5], 128  }
   0xc   :  { %322 = vsyncadd [#allocation5], 4294967168  ;;  %v253_v0 = vld [vmem:[#allocation4] sm:$0xff]  ;;  %v59_v1 = vld [vmem:[#allocation2] sm:$0xff]  ;;  %vm74_vm0 = vcmask 130048   ;;  %vm131_vm1 = vcmask 523264  }
   0xd   :  { %v60_v2 = vld [vmem:[#allocation2 + $0x8] sm:$0xff]  ;;  %85 = vmatpush.bf16.msra.mxu0 %v253_v0  ;;  %v257_v4 = vld [vmem:[%s419_s3 + $0x18] sm:$0xff]  ;;  %v256_v5 = vld [vmem:[%s419_s3 + $0x10] sm:$0xff]  ;;  %vm205_vm2 = vcmask 64512  }
   0xe   :  { %v61_v3 = vpack.c.bf16 %v60_v2, %v59_v1  ;;  %139 = vmatpush.bf16.msra.mxu1 %v257_v4  ;;  %v255_v6 = vld [vmem:[%s419_s3 + $0x8] sm:$0xff]  ;;  %v254_v7 = vld [vmem:[%s419_s3] sm:$0xff]  ;;  %v261_v16 = vld [vmem:[%s421_s5 + $0x18] sm:$0xff] }
   0xf   :  { %v268_v9 = vld [vmem:[%s418_s2] ss:$0 sm:$0xff]  ;;  %195 = vmatpush.bf16.msra.mxu2 %v261_v16  ;;  %v260_v17 = vld [vmem:[%s421_s5 + $0x10] sm:$0xff]  ;;  %v259_v18 = vld [vmem:[%s421_s5 + $0x8] sm:$0xff] }
  0x10   :  { %218 = vmatmul.msk.bf16.vlgmr.msra.gmra.mxu0 %vm74_vm0, %v61_v3  ;;  %v258_v19 = vld [vmem:[%s421_s5] sm:$0xff] }
  0x11   :  { %v269_v21 = vld [vmem:[%s420_s4] ss:$0 sm:$0xff] }
  0x12   :  { %140 = vmatpush.bf16.msra.mxu1 %v256_v5  ;;  %v270_v28 = vld [vmem:[%s422_s6] ss:$0 sm:$0xff] }
  0x13   :  { %196 = vmatpush.bf16.msra.mxu2 %v260_v17 }
  0x16   :  { %141 = vmatpush.bf16.msra.mxu1 %v255_v6 }
  0x17   :  { %197 = vmatpush.bf16.msra.mxu2 %v259_v18 }
  0x1a   :  { %142 = vmatpush.bf16.msra.mxu1 %v254_v7 }
  0x1b   :  { %198 = vmatpush.bf16.msra.mxu2 %v258_v19 }
  0x8d   :  { %v87_v8 = vpop.f32.mrf.mxu0 }
  0x8e   :  { %v88_v10 = vadd.f32 %v268_v9, %v87_v8 }
  0x90   :  { %v92_v13 = vmax.f32 %v88_v10, 0.0 }
  0x95   :  { %v89_v11 = vpop.f32.mrf.mxu0 }
  0x96   :  { %v90_v12 = vadd.f32 %v268_v9, %v89_v11 }
  0x98   :  { %v93_v14 = vmax.f32 %v90_v12, 0.0 }
  0x9a   :  { %v94_v15 = vpack.c.bf16 %v93_v14, %v92_v13 }
  0x9c   :  { %235 = vmatmul.msk.bf16.vlgmr.msra.gmra.mxu1 %vm131_vm1, %v94_v15 }
 0x119   :  { %v144_v20 = vpop.f32.mrf.mxu1 }
 0x11a   :  { %v145_v22 = vadd.f32 %v269_v21, %v144_v20 }
 0x11c   :  { %v149_v25 = vmax.f32 %v145_v22, 0.0 }
 0x121   :  { %v146_v23 = vpop.f32.mrf.mxu1 }
 0x122   :  { %v147_v24 = vadd.f32 %v269_v21, %v146_v23 }
 0x124   :  { %v150_v26 = vmax.f32 %v147_v24, 0.0 }
 0x126   :  { %v151_v27 = vpack.c.bf16 %v150_v26, %v149_v25 }
 0x128   :  { %252 = vmatmul.msk.bf16.vlgmr.msra.gmra.mxu2 %vm131_vm1, %v151_v27 }
 0x1ab   :  { %v200_v29 = vpop.f32.mrf.mxu2 }
 0x1ac   :  { %v201_v30 = vadd.f32 %v270_v28, %v200_v29 }
 0x1ae   :  { %206 = vst.msk [vmem:[%s423_s7] sm:$0xff] %vm205_vm2, %v201_v30 }
 0x1b3   :  { %v202_v31 = vpop.f32.mrf.mxu2 }
 0x1b4   :  { %v203_v32 = vadd.f32 %v270_v28, %v202_v31 }
 0x1b6   :  { %207 = vst.msk [vmem:[%s423_s7 + $0x8] sm:$0xff] %vm205_vm2, %v203_v32 }
 0x1b7   :  { %212 = vsyncpa [#allocation3], 1 }
 0x1b8   :  { %213 = vsyncpa [#allocation5], 1 }

</bundles_post_ra>
